<compile_context>
chip_gen: v7x
topology: tpu7x:2x2x1
jax: 0.10.0
libtpu: 0.0.40
codegen_flags: <defaults>
</compile_context>

<pallas_src>
import functools

import jax
import jax.numpy as jnp
from jax import lax
from jax.experimental import pallas as pl
from jax.experimental.pallas import tpu as pltpu

_LANES = 128


def _round_up(x, m):
    return (x + m - 1) // m * m


def _pick_t_chunk(T, TB, GW, itemsize, budget_bytes=8 << 20, max_chunk=64):
    """Largest divisor of T such that a double-buffered x_proj chunk stays
    within `budget_bytes` (and <= max_chunk)."""
    per_step = TB * GW * itemsize
    cap = min(max_chunk, max(1, budget_bytes // (2 * per_step)), T)
    for c in range(int(cap), 0, -1):
        if T % c == 0:
            return c
    return 1


def _lstm_chunk_kernel(xp_ref, whh_ref, h_out_ref, h_sc, c_sc, *,
                       t_chunk, hidden, unroll):
    """One (batch-block, time-chunk) grid step of the LSTM recurrence.

    xp_ref : (T_CHUNK, TB, GW) precomputed x @ W_ih^T + (b_ih + b_hh), compact
             gate layout [i|f|g|o] each of width `hidden`, padded to GW lanes.
    whh_ref: (hidden, GW) W_hh^T in the same compact layout.
    h_out  : (TB, hidden) final hidden state (written on the last chunk).
    h_sc, c_sc : (TB, hidden) f32 VMEM scratch carrying state across chunks.
    """
    t_blk = pl.program_id(1)

    @pl.when(t_blk == 0)
    def _():
        h_sc[...] = jnp.zeros_like(h_sc)
        c_sc[...] = jnp.zeros_like(c_sc)

    whh = whh_ref[...]
    H = hidden
    small = (4 * H <= _LANES)   # all four gates fit a single 128-lane vreg

    def sigmoid_t(x):
        # sigmoid(x) == 0.5 * tanh(0.5 * x) + 0.5 : one EUP push (tanh) plus a
        # cheap VPU fma instead of exp + divide (2 EUP-class ops).
        return 0.5 * jnp.tanh(0.5 * x) + 0.5

    def step(t, carry):
        h, c = carry
        gates = xp_ref[t].astype(jnp.float32) + jnp.dot(
            h.astype(whh.dtype), whh, preferred_element_type=jnp.float32)
        if small:
            # 2 full-width EUP pushes over the packed gates, then static
            # sub-slices (lane shuffles handled by Mosaic, XLU slot).
            sg = sigmoid_t(gates)
            th = jnp.tanh(gates)
            i_g = sg[:, 0 * H:1 * H]
            f_g = sg[:, 1 * H:2 * H]
            g_g = th[:, 2 * H:3 * H]
            o_g = sg[:, 3 * H:4 * H]
        else:
            i_g = sigmoid_t(gates[:, 0 * H:1 * H])
            f_g = sigmoid_t(gates[:, 1 * H:2 * H])
            g_g = jnp.tanh(gates[:, 2 * H:3 * H])
            o_g = sigmoid_t(gates[:, 3 * H:4 * H])
        c = f_g * c + i_g * g_g
        h = o_g * jnp.tanh(c)
        return (h, c)

    h, c = lax.fori_loop(0, t_chunk, step, (h_sc[...], c_sc[...]),
                         unroll=unroll)
    h_sc[...] = h
    c_sc[...] = c

    @pl.when(t_blk == pl.num_programs(1) - 1)
    def _():
        h_out_ref[...] = h


def lstm_regressor_forward(x, w_ih, w_hh, b_ih, b_hh, w_fc, b_fc,
                           matmul_dtype=jnp.bfloat16):
    """x: (B, T, I). PyTorch-shaped params: w_ih (4H, I), w_hh (4H, H),
       b_ih (4H,), b_hh (4H,), w_fc (1, H), b_fc (1,). Returns (B, 1)."""
    B, T, I = x.shape
    H = w_hh.shape[1]
    GW = _round_up(4 * H, _LANES)          # packed gate width (lane-aligned)
    itemsize = jnp.dtype(matmul_dtype).itemsize
    hi = lax.Precision.HIGHEST

    x = x.astype(jnp.float32)
    wih_t = jnp.transpose(w_ih).astype(jnp.float32)           # (I, 4H)
    whh_t = jnp.transpose(w_hh).astype(jnp.float32)           # (H, 4H)
    bias = (b_ih + b_hh).astype(jnp.float32).reshape(1, 1, 4 * H)

    # Hoisted input projection: one big MXU matmul, time-major layout.
    x_proj = jnp.einsum("bti,ig->tbg", x, wih_t, precision=hi,
                        preferred_element_type=jnp.float32) + bias  # (T,B,4H)
    if GW != 4 * H:
        x_proj = jnp.pad(x_proj, ((0, 0), (0, 0), (0, GW - 4 * H)))
        whh_t = jnp.pad(whh_t, ((0, 0), (0, GW - 4 * H)))
    x_proj = x_proj.astype(matmul_dtype)
    whh_t = whh_t.astype(matmul_dtype)

    # Split the batch only when it is big enough that per-step cost actually
    # scales with TB; on single-TC chips a serial split just doubles runtime.
    if B % 16 == 0 and B >= 512:
        TB = B // 2
    else:
        TB = B
    n_b_blocks = B // TB

    # Time-chunk size: keep double-buffered x_proj chunks within a small VMEM
    # budget so HBM->VMEM DMA overlaps compute and the tile fits every chip.
    t_chunk = _pick_t_chunk(T, TB, GW, itemsize)
    n_t_chunks = T // t_chunk
    unroll = True if t_chunk <= 16 else 8

    kernel = functools.partial(_lstm_chunk_kernel, t_chunk=t_chunk,
                               hidden=H, unroll=unroll)

    grid_spec = pltpu.PrefetchScalarGridSpec(
        num_scalar_prefetch=0,
        grid=(n_b_blocks, n_t_chunks),
        in_specs=[
            pl.BlockSpec((t_chunk, TB, GW), lambda b, t: (t, b, 0)),  # x_proj
            pl.BlockSpec((H, GW), lambda b, t: (0, 0)),               # W_hh^T
        ],
        out_specs=pl.BlockSpec((TB, H), lambda b, t: (b, 0)),         # h_n
        scratch_shapes=[
            pltpu.VMEM((TB, H), jnp.float32),   # h carried across chunks
            pltpu.VMEM((TB, H), jnp.float32),   # c carried across chunks
        ],
    )

    # Explicit VMEM budget: double-buffered chunk + weights + state + f32
    # temporaries, with headroom, clamped well under v7x's 64 MiB physical.
    est = (2 * t_chunk * TB * GW * itemsize      # x_proj double buffer
           + 2 * H * GW * itemsize               # W_hh^T buffers
           + 4 * TB * H * 4                      # h/c scratch + output block
           + t_chunk * TB * GW * 4)              # in-kernel f32 temporaries
    vmem_limit = int(min(max(3 * est + (8 << 20), 32 << 20), 48 << 20))

    h_n = pl.pallas_call(
        kernel,
        out_shape=jax.ShapeDtypeStruct((B, H), jnp.float32),
        grid_spec=grid_spec,
        compiler_params=pltpu.CompilerParams(
            dimension_semantics=("parallel", "arbitrary"),
            vmem_limit_bytes=vmem_limit),
    )(x_proj, whh_t)

    # fc head outside the kernel: trivial (B, 1) GEMV.
    out = jnp.dot(h_n, jnp.transpose(w_fc).astype(jnp.float32), precision=hi) \
        + b_fc.astype(jnp.float32).reshape(1, 1)
    return out


def _reference(x, w_ih, w_hh, b_ih, b_hh, w_fc, b_fc):
    """Pure-JAX reference identical to the PyTorch forward (f32)."""
    B, T, I = x.shape
    H = w_hh.shape[1]
    bias = b_ih + b_hh
    hi = lax.Precision.HIGHEST

    def step(carry, x_t):
        h, c = carry
        gates = (jnp.dot(x_t, w_ih.T, precision=hi)
                 + jnp.dot(h, w_hh.T, precision=hi) + bias)
        i_g = jax.nn.sigmoid(gates[:, 0 * H:1 * H])
        f_g = jax.nn.sigmoid(gates[:, 1 * H:2 * H])
        g_g = jnp.tanh(gates[:, 2 * H:3 * H])
        o_g = jax.nn.sigmoid(gates[:, 3 * H:4 * H])
        c = f_g * c + i_g * g_g
        h = o_g * jnp.tanh(c)
        return (h, c), None

    h0 = jnp.zeros((B, H), jnp.float32)
    c0 = jnp.zeros((B, H), jnp.float32)
    (h_n, _), _ = lax.scan(step, (h0, c0), jnp.swapaxes(x, 0, 1))
    return jnp.dot(h_n, w_fc.T, precision=hi) + b_fc


if __name__ == "__main__":
    B, T, I, H = 8, 8, 16, 32

    key = jax.random.PRNGKey(0)
    ks = jax.random.split(key, 7)
    scale = 1.0 / jnp.sqrt(H)
    x = jax.random.normal(ks[0], (B, T, I), jnp.float32)
    w_ih = jax.random.uniform(ks[1], (4 * H, I), jnp.float32, -scale, scale)
    w_hh = jax.random.uniform(ks[2], (4 * H, H), jnp.float32, -scale, scale)
    b_ih = jax.random.uniform(ks[3], (4 * H,), jnp.float32, -scale, scale)
    b_hh = jax.random.uniform(ks[4], (4 * H,), jnp.float32, -scale, scale)
    w_fc = jax.random.uniform(ks[5], (1, H), jnp.float32, -scale, scale)
    b_fc = jax.random.uniform(ks[6], (1,), jnp.float32, -scale, scale)

    ref = _reference(x, w_ih, w_hh, b_ih, b_hh, w_fc, b_fc)

    # Strict(ish) parity path: f32 MXU inputs.
    out_f32 = lstm_regressor_forward(x, w_ih, w_hh, b_ih, b_hh, w_fc, b_fc,
                                     matmul_dtype=jnp.float32)
    out_f32 = jax.block_until_ready(out_f32)
    assert out_f32.shape == (B, 1)
    assert jnp.allclose(out_f32, ref, atol=2e-3, rtol=2e-3), (out_f32, ref)

    # Default fast path: bf16 MXU inputs, f32 accumulation and f32 cell/hidden
    # state -> deliberately looser tolerance vs the f32 reference.
    out_bf16 = lstm_regressor_forward(x, w_ih, w_hh, b_ih, b_hh, w_fc, b_fc)
    out_bf16 = jax.block_until_ready(out_bf16)
    assert out_bf16.shape == (B, 1)
    assert jnp.allclose(out_bf16, ref, atol=3e-2, rtol=3e-2), (out_bf16, ref)

    print("KERNEL_OK")
</pallas_src>

<mosaic_0001>
module attributes {stable_mosaic.version = 11 : i64} {
  func.func @_lstm_chunk_kernel(%arg0: i32, %arg1: i32, %arg2: memref<8x8x128xf32, #tpu.memory_space<vmem>>, %arg3: memref<32x128xf32, #tpu.memory_space<vmem>>, %arg4: memref<8x32xf32, #tpu.memory_space<vmem>>, %arg5: memref<8x32xf32, #tpu.memory_space<vmem>>, %arg6: memref<8x32xf32, #tpu.memory_space<vmem>>) attributes {dimension_semantics = [#tpu.dimension_semantics<parallel>, #tpu.dimension_semantics<arbitrary>], iteration_bounds = array<i64: 1, 1>, scalar_prefetch = 0 : i64, scratch_operands = 2 : i64, tpu.core_type = #tpu.core_type<tc>, window_params = [{transform_indices = @transform_0, window_bounds = array<i64: 8, 8, 128>}, {pipeline_mode = #tpu.pipeline_mode<synchronous>, transform_indices = @transform_1, window_bounds = array<i64: 32, 128>}, {transform_indices = @transform_2, window_bounds = array<i64: 8, 32>}]} {
    %c0_i32 = arith.constant 0 : i32
    %0 = arith.cmpi eq, %arg1, %c0_i32 : i32
    %1 = arith.extui %0 : i1 to i32
    %c0_i32_0 = arith.constant 0 : i32
    %2 = arith.cmpi ne, %1, %c0_i32_0 : i32
    scf.if %2 {
      %cst_60 = arith.constant 0.000000e+00 : f32
      %187 = vector.broadcast %cst_60 : f32 to vector<8x32xf32>
      %c0_61 = arith.constant 0 : index
      %c0_62 = arith.constant 0 : index
      %188 = vector.load %arg5[%c0_61, %c0_62] : memref<8x32xf32, #tpu.memory_space<vmem>>, vector<8x32xf32>
      tpu.vector_store %arg5[%c0_61, %c0_62], %187 {strides = array<i32>} : memref<8x32xf32, #tpu.memory_space<vmem>>, vector<8x32xf32>,
      %cst_63 = arith.constant 0.000000e+00 : f32
      %189 = vector.broadcast %cst_63 : f32 to vector<8x32xf32>
      %c0_64 = arith.constant 0 : index
      %c0_65 = arith.constant 0 : index
      %190 = vector.load %arg6[%c0_64, %c0_65] : memref<8x32xf32, #tpu.memory_space<vmem>>, vector<8x32xf32>
      tpu.vector_store %arg6[%c0_64, %c0_65], %189 {strides = array<i32>} : memref<8x32xf32, #tpu.memory_space<vmem>>, vector<8x32xf32>,
    } else {
    }
    %c0 = arith.constant 0 : index
    %c0_1 = arith.constant 0 : index
    %3 = vector.load %arg3[%c0, %c0_1] : memref<32x128xf32, #tpu.memory_space<vmem>>, vector<32x128xf32>
    %c0_2 = arith.constant 0 : index
    %c0_3 = arith.constant 0 : index
    %4 = vector.load %arg5[%c0_2, %c0_3] : memref<8x32xf32, #tpu.memory_space<vmem>>, vector<8x32xf32>
    %c0_4 = arith.constant 0 : index
    %c0_5 = arith.constant 0 : index
    %5 = vector.load %arg6[%c0_4, %c0_5] : memref<8x32xf32, #tpu.memory_space<vmem>>, vector<8x32xf32>
    %c0_i32_6 = arith.constant 0 : i32
    %6 = arith.index_cast %c0_i32_6 : i32 to index
    %c0_7 = arith.constant 0 : index
    %c0_8 = arith.constant 0 : index
    %7 = vector.load %arg2[%6, %c0_7, %c0_8] : memref<8x8x128xf32, #tpu.memory_space<vmem>>, vector<1x8x128xf32>
    %8 = vector.shape_cast %7 : vector<1x8x128xf32> to vector<8x128xf32>
    %cst = arith.constant dense<0.000000e+00> : vector<8x128xf32>
    %9 = tpu.matmul %4, %3, %cst {dimension_numbers = #tpu.dot_dimension_numbers<[1], [0], [0], [1], [0, 0, 1, 1], [], []>} : vector<8x32xf32>, vector<32x128xf32>, vector<8x128xf32> -> vector<8x128xf32>
    %10 = arith.addf %8, %9 : vector<8x128xf32>
    %cst_9 = arith.constant 5.000000e-01 : f32
    %11 = vector.broadcast %cst_9 : f32 to vector<8x128xf32>
    %12 = arith.mulf %11, %10 : vector<8x128xf32>
    %13 = math.tanh %12 : vector<8x128xf32>
    %cst_10 = arith.constant 5.000000e-01 : f32
    %14 = vector.broadcast %cst_10 : f32 to vector<8x128xf32>
    %15 = arith.mulf %14, %13 : vector<8x128xf32>
    %cst_11 = arith.constant 5.000000e-01 : f32
    %16 = vector.broadcast %cst_11 : f32 to vector<8x128xf32>
    %17 = arith.addf %15, %16 : vector<8x128xf32>
    %18 = math.tanh %10 : vector<8x128xf32>
    %19 = vector.extract_strided_slice %17 {offsets = [0, 0], sizes = [8, 32], strides = [1, 1]} : vector<8x128xf32> to vector<8x32xf32>
    %20 = vector.extract_strided_slice %17 {offsets = [0, 32], sizes = [8, 32], strides = [1, 1]} : vector<8x128xf32> to vector<8x32xf32>
    %21 = vector.extract_strided_slice %18 {offsets = [0, 64], sizes = [8, 32], strides = [1, 1]} : vector<8x128xf32> to vector<8x32xf32>
    %22 = vector.extract_strided_slice %17 {offsets = [0, 96], sizes = [8, 32], strides = [1, 1]} : vector<8x128xf32> to vector<8x32xf32>
    %23 = arith.mulf %20, %5 : vector<8x32xf32>
    %24 = arith.mulf %19, %21 : vector<8x32xf32>
    %25 = arith.addf %23, %24 : vector<8x32xf32>
    %26 = math.tanh %25 : vector<8x32xf32>
    %27 = arith.mulf %22, %26 : vector<8x32xf32>
    %c1_i32 = arith.constant 1 : i32
    %28 = arith.index_cast %c1_i32 : i32 to index
    %c0_12 = arith.constant 0 : index
    %c0_13 = arith.constant 0 : index
    %29 = vector.load %arg2[%28, %c0_12, %c0_13] : memref<8x8x128xf32, #tpu.memory_space<vmem>>, vector<1x8x128xf32>
    %30 = vector.shape_cast %29 : vector<1x8x128xf32> to vector<8x128xf32>
    %cst_14 = arith.constant dense<0.000000e+00> : vector<8x128xf32>
    %31 = tpu.matmul %27, %3, %cst_14 {dimension_numbers = #tpu.dot_dimension_numbers<[1], [0], [0], [1], [0, 0, 1, 1], [], []>} : vector<8x32xf32>, vector<32x128xf32>, vector<8x128xf32> -> vector<8x128xf32>
    %32 = arith.addf %30, %31 : vector<8x128xf32>
    %cst_15 = arith.constant 5.000000e-01 : f32
    %33 = vector.broadcast %cst_15 : f32 to vector<8x128xf32>
    %34 = arith.mulf %33, %32 : vector<8x128xf32>
    %35 = math.tanh %34 : vector<8x128xf32>
    %cst_16 = arith.constant 5.000000e-01 : f32
    %36 = vector.broadcast %cst_16 : f32 to vector<8x128xf32>
    %37 = arith.mulf %36, %35 : vector<8x128xf32>
    %cst_17 = arith.constant 5.000000e-01 : f32
    %38 = vector.broadcast %cst_17 : f32 to vector<8x128xf32>
    %39 = arith.addf %37, %38 : vector<8x128xf32>
    %40 = math.tanh %32 : vector<8x128xf32>
    %41 = vector.extract_strided_slice %39 {offsets = [0, 0], sizes = [8, 32], strides = [1, 1]} : vector<8x128xf32> to vector<8x32xf32>
    %42 = vector.extract_strided_slice %39 {offsets = [0, 32], sizes = [8, 32], strides = [1, 1]} : vector<8x128xf32> to vector<8x32xf32>
    %43 = vector.extract_strided_slice %40 {offsets = [0, 64], sizes = [8, 32], strides = [1, 1]} : vector<8x128xf32> to vector<8x32xf32>
    %44 = vector.extract_strided_slice %39 {offsets = [0, 96], sizes = [8, 32], strides = [1, 1]} : vector<8x128xf32> to vector<8x32xf32>
    %45 = arith.mulf %42, %25 : vector<8x32xf32>
    %46 = arith.mulf %41, %43 : vector<8x32xf32>
    %47 = arith.addf %45, %46 : vector<8x32xf32>
    %48 = math.tanh %47 : vector<8x32xf32>
    %49 = arith.mulf %44, %48 : vector<8x32xf32>
    %c2_i32 = arith.constant 2 : i32
    %50 = arith.index_cast %c2_i32 : i32 to index
    %c0_18 = arith.constant 0 : index
    %c0_19 = arith.constant 0 : index
    %51 = vector.load %arg2[%50, %c0_18, %c0_19] : memref<8x8x128xf32, #tpu.memory_space<vmem>>, vector<1x8x128xf32>
    %52 = vector.shape_cast %51 : vector<1x8x128xf32> to vector<8x128xf32>
    %cst_20 = arith.constant dense<0.000000e+00> : vector<8x128xf32>
    %53 = tpu.matmul %49, %3, %cst_20 {dimension_numbers = #tpu.dot_dimension_numbers<[1], [0], [0], [1], [0, 0, 1, 1], [], []>} : vector<8x32xf32>, vector<32x128xf32>, vector<8x128xf32> -> vector<8x128xf32>
    %54 = arith.addf %52, %53 : vector<8x128xf32>
    %cst_21 = arith.constant 5.000000e-01 : f32
    %55 = vector.broadcast %cst_21 : f32 to vector<8x128xf32>
    %56 = arith.mulf %55, %54 : vector<8x128xf32>
    %57 = math.tanh %56 : vector<8x128xf32>
    %cst_22 = arith.constant 5.000000e-01 : f32
    %58 = vector.broadcast %cst_22 : f32 to vector<8x128xf32>
    %59 = arith.mulf %58, %57 : vector<8x128xf32>
    %cst_23 = arith.constant 5.000000e-01 : f32
    %60 = vector.broadcast %cst_23 : f32 to vector<8x128xf32>
    %61 = arith.addf %59, %60 : vector<8x128xf32>
    %62 = math.tanh %54 : vector<8x128xf32>
    %63 = vector.extract_strided_slice %61 {offsets = [0, 0], sizes = [8, 32], strides = [1, 1]} : vector<8x128xf32> to vector<8x32xf32>
    %64 = vector.extract_strided_slice %61 {offsets = [0, 32], sizes = [8, 32], strides = [1, 1]} : vector<8x128xf32> to vector<8x32xf32>
    %65 = vector.extract_strided_slice %62 {offsets = [0, 64], sizes = [8, 32], strides = [1, 1]} : vector<8x128xf32> to vector<8x32xf32>
    %66 = vector.extract_strided_slice %61 {offsets = [0, 96], sizes = [8, 32], strides = [1, 1]} : vector<8x128xf32> to vector<8x32xf32>
    %67 = arith.mulf %64, %47 : vector<8x32xf32>
    %68 = arith.mulf %63, %65 : vector<8x32xf32>
    %69 = arith.addf %67, %68 : vector<8x32xf32>
    %70 = math.tanh %69 : vector<8x32xf32>
    %71 = arith.mulf %66, %70 : vector<8x32xf32>
    %c3_i32 = arith.constant 3 : i32
    %72 = arith.index_cast %c3_i32 : i32 to index
    %c0_24 = arith.constant 0 : index
    %c0_25 = arith.constant 0 : index
    %73 = vector.load %arg2[%72, %c0_24, %c0_25] : memref<8x8x128xf32, #tpu.memory_space<vmem>>, vector<1x8x128xf32>
    %74 = vector.shape_cast %73 : vector<1x8x128xf32> to vector<8x128xf32>
    %cst_26 = arith.constant dense<0.000000e+00> : vector<8x128xf32>
    %75 = tpu.matmul %71, %3, %cst_26 {dimension_numbers = #tpu.dot_dimension_numbers<[1], [0], [0], [1], [0, 0, 1, 1], [], []>} : vector<8x32xf32>, vector<32x128xf32>, vector<8x128xf32> -> vector<8x128xf32>
    %76 = arith.addf %74, %75 : vector<8x128xf32>
    %cst_27 = arith.constant 5.000000e-01 : f32
    %77 = vector.broadcast %cst_27 : f32 to vector<8x128xf32>
    %78 = arith.mulf %77, %76 : vector<8x128xf32>
    %79 = math.tanh %78 : vector<8x128xf32>
    %cst_28 = arith.constant 5.000000e-01 : f32
    %80 = vector.broadcast %cst_28 : f32 to vector<8x128xf32>
    %81 = arith.mulf %80, %79 : vector<8x128xf32>
    %cst_29 = arith.constant 5.000000e-01 : f32
    %82 = vector.broadcast %cst_29 : f32 to vector<8x128xf32>
    %83 = arith.addf %81, %82 : vector<8x128xf32>
    %84 = math.tanh %76 : vector<8x128xf32>
    %85 = vector.extract_strided_slice %83 {offsets = [0, 0], sizes = [8, 32], strides = [1, 1]} : vector<8x128xf32> to vector<8x32xf32>
    %86 = vector.extract_strided_slice %83 {offsets = [0, 32], sizes = [8, 32], strides = [1, 1]} : vector<8x128xf32> to vector<8x32xf32>
    %87 = vector.extract_strided_slice %84 {offsets = [0, 64], sizes = [8, 32], strides = [1, 1]} : vector<8x128xf32> to vector<8x32xf32>
    %88 = vector.extract_strided_slice %83 {offsets = [0, 96], sizes = [8, 32], strides = [1, 1]} : vector<8x128xf32> to vector<8x32xf32>
    %89 = arith.mulf %86, %69 : vector<8x32xf32>
    %90 = arith.mulf %85, %87 : vector<8x32xf32>
    %91 = arith.addf %89, %90 : vector<8x32xf32>
    %92 = math.tanh %91 : vector<8x32xf32>
    %93 = arith.mulf %88, %92 : vector<8x32xf32>
    %c4_i32 = arith.constant 4 : i32
    %94 = arith.index_cast %c4_i32 : i32 to index
    %c0_30 = arith.constant 0 : index
    %c0_31 = arith.constant 0 : index
    %95 = vector.load %arg2[%94, %c0_30, %c0_31] : memref<8x8x128xf32, #tpu.memory_space<vmem>>, vector<1x8x128xf32>
    %96 = vector.shape_cast %95 : vector<1x8x128xf32> to vector<8x128xf32>
    %cst_32 = arith.constant dense<0.000000e+00> : vector<8x128xf32>
    %97 = tpu.matmul %93, %3, %cst_32 {dimension_numbers = #tpu.dot_dimension_numbers<[1], [0], [0], [1], [0, 0, 1, 1], [], []>} : vector<8x32xf32>, vector<32x128xf32>, vector<8x128xf32> -> vector<8x128xf32>
    %98 = arith.addf %96, %97 : vector<8x128xf32>
    %cst_33 = arith.constant 5.000000e-01 : f32
    %99 = vector.broadcast %cst_33 : f32 to vector<8x128xf32>
    %100 = arith.mulf %99, %98 : vector<8x128xf32>
    %101 = math.tanh %100 : vector<8x128xf32>
    %cst_34 = arith.constant 5.000000e-01 : f32
    %102 = vector.broadcast %cst_34 : f32 to vector<8x128xf32>
    %103 = arith.mulf %102, %101 : vector<8x128xf32>
    %cst_35 = arith.constant 5.000000e-01 : f32
    %104 = vector.broadcast %cst_35 : f32 to vector<8x128xf32>
    %105 = arith.addf %103, %104 : vector<8x128xf32>
    %106 = math.tanh %98 : vector<8x128xf32>
    %107 = vector.extract_strided_slice %105 {offsets = [0, 0], sizes = [8, 32], strides = [1, 1]} : vector<8x128xf32> to vector<8x32xf32>
    %108 = vector.extract_strided_slice %105 {offsets = [0, 32], sizes = [8, 32], strides = [1, 1]} : vector<8x128xf32> to vector<8x32xf32>
    %109 = vector.extract_strided_slice %106 {offsets = [0, 64], sizes = [8, 32], strides = [1, 1]} : vector<8x128xf32> to vector<8x32xf32>
    %110 = vector.extract_strided_slice %105 {offsets = [0, 96], sizes = [8, 32], strides = [1, 1]} : vector<8x128xf32> to vector<8x32xf32>
    %111 = arith.mulf %108, %91 : vector<8x32xf32>
    %112 = arith.mulf %107, %109 : vector<8x32xf32>
    %113 = arith.addf %111, %112 : vector<8x32xf32>
    %114 = math.tanh %113 : vector<8x32xf32>
    %115 = arith.mulf %110, %114 : vector<8x32xf32>
    %c5_i32 = arith.constant 5 : i32
    %116 = arith.index_cast %c5_i32 : i32 to index
    %c0_36 = arith.constant 0 : index
    %c0_37 = arith.constant 0 : index
    %117 = vector.load %arg2[%116, %c0_36, %c0_37] : memref<8x8x128xf32, #tpu.memory_space<vmem>>, vector<1x8x128xf32>
    %118 = vector.shape_cast %117 : vector<1x8x128xf32> to vector<8x128xf32>
    %cst_38 = arith.constant dense<0.000000e+00> : vector<8x128xf32>
    %119 = tpu.matmul %115, %3, %cst_38 {dimension_numbers = #tpu.dot_dimension_numbers<[1], [0], [0], [1], [0, 0, 1, 1], [], []>} : vector<8x32xf32>, vector<32x128xf32>, vector<8x128xf32> -> vector<8x128xf32>
    %120 = arith.addf %118, %119 : vector<8x128xf32>
    %cst_39 = arith.constant 5.000000e-01 : f32
    %121 = vector.broadcast %cst_39 : f32 to vector<8x128xf32>
    %122 = arith.mulf %121, %120 : vector<8x128xf32>
    %123 = math.tanh %122 : vector<8x128xf32>
    %cst_40 = arith.constant 5.000000e-01 : f32
    %124 = vector.broadcast %cst_40 : f32 to vector<8x128xf32>
    %125 = arith.mulf %124, %123 : vector<8x128xf32>
    %cst_41 = arith.constant 5.000000e-01 : f32
    %126 = vector.broadcast %cst_41 : f32 to vector<8x128xf32>
    %127 = arith.addf %125, %126 : vector<8x128xf32>
    %128 = math.tanh %120 : vector<8x128xf32>
    %129 = vector.extract_strided_slice %127 {offsets = [0, 0], sizes = [8, 32], strides = [1, 1]} : vector<8x128xf32> to vector<8x32xf32>
    %130 = vector.extract_strided_slice %127 {offsets = [0, 32], sizes = [8, 32], strides = [1, 1]} : vector<8x128xf32> to vector<8x32xf32>
    %131 = vector.extract_strided_slice %128 {offsets = [0, 64], sizes = [8, 32], strides = [1, 1]} : vector<8x128xf32> to vector<8x32xf32>
    %132 = vector.extract_strided_slice %127 {offsets = [0, 96], sizes = [8, 32], strides = [1, 1]} : vector<8x128xf32> to vector<8x32xf32>
    %133 = arith.mulf %130, %113 : vector<8x32xf32>
    %134 = arith.mulf %129, %131 : vector<8x32xf32>
    %135 = arith.addf %133, %134 : vector<8x32xf32>
    %136 = math.tanh %135 : vector<8x32xf32>
    %137 = arith.mulf %132, %136 : vector<8x32xf32>
    %c6_i32 = arith.constant 6 : i32
    %138 = arith.index_cast %c6_i32 : i32 to index
    %c0_42 = arith.constant 0 : index
    %c0_43 = arith.constant 0 : index
    %139 = vector.load %arg2[%138, %c0_42, %c0_43] : memref<8x8x128xf32, #tpu.memory_space<vmem>>, vector<1x8x128xf32>
    %140 = vector.shape_cast %139 : vector<1x8x128xf32> to vector<8x128xf32>
    %cst_44 = arith.constant dense<0.000000e+00> : vector<8x128xf32>
    %141 = tpu.matmul %137, %3, %cst_44 {dimension_numbers = #tpu.dot_dimension_numbers<[1], [0], [0], [1], [0, 0, 1, 1], [], []>} : vector<8x32xf32>, vector<32x128xf32>, vector<8x128xf32> -> vector<8x128xf32>
    %142 = arith.addf %140, %141 : vector<8x128xf32>
    %cst_45 = arith.constant 5.000000e-01 : f32
    %143 = vector.broadcast %cst_45 : f32 to vector<8x128xf32>
    %144 = arith.mulf %143, %142 : vector<8x128xf32>
    %145 = math.tanh %144 : vector<8x128xf32>
    %cst_46 = arith.constant 5.000000e-01 : f32
    %146 = vector.broadcast %cst_46 : f32 to vector<8x128xf32>
    %147 = arith.mulf %146, %145 : vector<8x128xf32>
    %cst_47 = arith.constant 5.000000e-01 : f32
    %148 = vector.broadcast %cst_47 : f32 to vector<8x128xf32>
    %149 = arith.addf %147, %148 : vector<8x128xf32>
    %150 = math.tanh %142 : vector<8x128xf32>
    %151 = vector.extract_strided_slice %149 {offsets = [0, 0], sizes = [8, 32], strides = [1, 1]} : vector<8x128xf32> to vector<8x32xf32>
    %152 = vector.extract_strided_slice %149 {offsets = [0, 32], sizes = [8, 32], strides = [1, 1]} : vector<8x128xf32> to vector<8x32xf32>
    %153 = vector.extract_strided_slice %150 {offsets = [0, 64], sizes = [8, 32], strides = [1, 1]} : vector<8x128xf32> to vector<8x32xf32>
    %154 = vector.extract_strided_slice %149 {offsets = [0, 96], sizes = [8, 32], strides = [1, 1]} : vector<8x128xf32> to vector<8x32xf32>
    %155 = arith.mulf %152, %135 : vector<8x32xf32>
    %156 = arith.mulf %151, %153 : vector<8x32xf32>
    %157 = arith.addf %155, %156 : vector<8x32xf32>
    %158 = math.tanh %157 : vector<8x32xf32>
    %159 = arith.mulf %154, %158 : vector<8x32xf32>
    %c7_i32 = arith.constant 7 : i32
    %160 = arith.index_cast %c7_i32 : i32 to index
    %c0_48 = arith.constant 0 : index
    %c0_49 = arith.constant 0 : index
    %161 = vector.load %arg2[%160, %c0_48, %c0_49] : memref<8x8x128xf32, #tpu.memory_space<vmem>>, vector<1x8x128xf32>
    %162 = vector.shape_cast %161 : vector<1x8x128xf32> to vector<8x128xf32>
    %cst_50 = arith.constant dense<0.000000e+00> : vector<8x128xf32>
    %163 = tpu.matmul %159, %3, %cst_50 {dimension_numbers = #tpu.dot_dimension_numbers<[1], [0], [0], [1], [0, 0, 1, 1], [], []>} : vector<8x32xf32>, vector<32x128xf32>, vector<8x128xf32> -> vector<8x128xf32>
    %164 = arith.addf %162, %163 : vector<8x128xf32>
    %cst_51 = arith.constant 5.000000e-01 : f32
    %165 = vector.broadcast %cst_51 : f32 to vector<8x128xf32>
    %166 = arith.mulf %165, %164 : vector<8x128xf32>
    %167 = math.tanh %166 : vector<8x128xf32>
    %cst_52 = arith.constant 5.000000e-01 : f32
    %168 = vector.broadcast %cst_52 : f32 to vector<8x128xf32>
    %169 = arith.mulf %168, %167 : vector<8x128xf32>
    %cst_53 = arith.constant 5.000000e-01 : f32
    %170 = vector.broadcast %cst_53 : f32 to vector<8x128xf32>
    %171 = arith.addf %169, %170 : vector<8x128xf32>
    %172 = math.tanh %164 : vector<8x128xf32>
    %173 = vector.extract_strided_slice %171 {offsets = [0, 0], sizes = [8, 32], strides = [1, 1]} : vector<8x128xf32> to vector<8x32xf32>
    %174 = vector.extract_strided_slice %171 {offsets = [0, 32], sizes = [8, 32], strides = [1, 1]} : vector<8x128xf32> to vector<8x32xf32>
    %175 = vector.extract_strided_slice %172 {offsets = [0, 64], sizes = [8, 32], strides = [1, 1]} : vector<8x128xf32> to vector<8x32xf32>
    %176 = vector.extract_strided_slice %171 {offsets = [0, 96], sizes = [8, 32], strides = [1, 1]} : vector<8x128xf32> to vector<8x32xf32>
    %177 = arith.mulf %174, %157 : vector<8x32xf32>
    %178 = arith.mulf %173, %175 : vector<8x32xf32>
    %179 = arith.addf %177, %178 : vector<8x32xf32>
    %180 = math.tanh %179 : vector<8x32xf32>
    %181 = arith.mulf %176, %180 : vector<8x32xf32>
    %c8_i32 = arith.constant 8 : i32
    %c0_54 = arith.constant 0 : index
    %c0_55 = arith.constant 0 : index
    %182 = vector.load %arg5[%c0_54, %c0_55] : memref<8x32xf32, #tpu.memory_space<vmem>>, vector<8x32xf32>
    tpu.vector_store %arg5[%c0_54, %c0_55], %181 {strides = array<i32>} : memref<8x32xf32, #tpu.memory_space<vmem>>, vector<8x32xf32>,
    %c0_56 = arith.constant 0 : index
    %c0_57 = arith.constant 0 : index
    %183 = vector.load %arg6[%c0_56, %c0_57] : memref<8x32xf32, #tpu.memory_space<vmem>>, vector<8x32xf32>
    tpu.vector_store %arg6[%c0_56, %c0_57], %179 {strides = array<i32>} : memref<8x32xf32, #tpu.memory_space<vmem>>, vector<8x32xf32>,
    %c0_i32_58 = arith.constant 0 : i32
    %184 = arith.cmpi eq, %arg1, %c0_i32_58 : i32
    %185 = arith.extui %184 : i1 to i32
    %c0_i32_59 = arith.constant 0 : i32
    %186 = arith.cmpi ne, %185, %c0_i32_59 : i32
    scf.if %186 {
      %c0_60 = arith.constant 0 : index
      %c0_61 = arith.constant 0 : index
      %187 = vector.load %arg4[%c0_60, %c0_61] : memref<8x32xf32, #tpu.memory_space<vmem>>, vector<8x32xf32>
      tpu.vector_store %arg4[%c0_60, %c0_61], %181 {strides = array<i32>} : memref<8x32xf32, #tpu.memory_space<vmem>>, vector<8x32xf32>,
    } else {
    }
    return
  }
  func.func @transform_0(%arg0: i32, %arg1: i32) -> (i32, i32, i32) {
    %c0_i32 = arith.constant 0 : i32
    %c0_i32_0 = arith.constant 0 : i32
    return %arg1, %arg0, %c0_i32 : i32, i32, i32
  }
  func.func @transform_1(%arg0: i32, %arg1: i32) -> (i32, i32) {
    %c0_i32 = arith.constant 0 : i32
    %c0_i32_0 = arith.constant 0 : i32
    %c0_i32_1 = arith.constant 0 : i32
    return %c0_i32, %c0_i32_0 : i32, i32
  }
  func.func @transform_2(%arg0: i32, %arg1: i32) -> (i32, i32) {
    %c0_i32 = arith.constant 0 : i32
    %c0_i32_0 = arith.constant 0 : i32
    return %arg0, %c0_i32 : i32, i32
  }
}

</mosaic_0001>

<bundles_post_ra>
// kernel: tpu_custom_call.1
= control target key start
LH: loop header
LB: loop body
LE: loop exit
PB: predicated region body
PF: predicated region fallthrough
CT: control target
= control target key end

     0   :  { %7 = vsyncpa [#allocation5], 0  ;;  %s1362_s0 = inlined_call_operand.hbm [shape: f32[8,8,128], index: 0, kind: input, shape index: {}]   ;;  %s1363_s1 = inlined_call_operand.hbm [shape: f32[32,128], index: 1, kind: input, shape index: {}]   ;;  %s1364_s2 = inlined_call_operand.hbm [shape: f32[8,32], index: 2, kind: output, shape index: {}]  }
   0x1   :  { %8 = vsyncpa [#allocation8], 0 }
   0x2   :  { %9 = vsyncpa [#allocation6], 0  ;;  %s1200_s9 = smov [#allocation4]   ;;  %s1128_s13 = scalar_lea.hbm %s1362_s0, 1024 }
   0x3   :  { %s15_s10 = sshll.u32 %s1200_s9, 4  ;;  %p1129_p0 = scmp.ne.s32.totalorder %s1362_s0, %s1128_s13  ;;  %s16_s10 = int_to_ptr.vmem [resolvable:$true] %s15_s10 }
   0x4   :  { %p1132_p1 = scmp.lt.u32.totalorder %s1128_s13, %s1362_s0 }
   0x6   :  { %p1134_p2 = pnand %p1132_p1, %p1129_p0 }
   0x8   :  { %1137 = shalt.err (!%p1134_p2)
}
   0x9   :  { %s1138_s18 = scalar_lea.vmem %s16_s10, 1024  ;;  %p1143_p4 = scmp.lt.s32.totalorder %s16_s10, %s16_s10 }
   0xa   :  { %p1139_p3 = scmp.ne.s32.totalorder %s16_s10, %s1138_s18  ;;  %p1144_p5 = scmp.lt.s32.totalorder %s1138_s18, %s1138_s18 }
   0xc   :  { %p1145_p6 = por %p1144_p5, %p1143_p4 }
   0xe   :  { %p1146_p7 = pnand %p1145_p6, %p1139_p3 }
  0x10   :  { %1149 = shalt.err (!%p1146_p7)
}
  0x11   :  { %s1201_s19 = smov 128   ;;  %s1202_s20 = smov 8  }
  0x12   :  { %21 = dma.hbm_to_vmem [thread:$0]  %s1362_s0, 1024, %s16_s10, [#allocation5], %s1201_s19, %s1201_s19, %s1202_s20  }
  0x13   :  { %s1203_s23 = smov [#allocation7]   ;;  %s1150_s27 = scalar_lea.hbm %s1363_s1, 512 }
  0x14   :  { %s27_s24 = sshll.u32 %s1203_s23, 4  ;;  %p1151_p8 = scmp.ne.s32.totalorder %s1363_s1, %s1150_s27  ;;  %s28_s24 = int_to_ptr.vmem [resolvable:$true] %s27_s24 }
  0x15   :  { %p1154_p9 = scmp.lt.u32.totalorder %s1150_s27, %s1363_s1 }
  0x17   :  { %p1156_p10 = pnand %p1154_p9, %p1151_p8 }
  0x19   :  { %1159 = shalt.err (!%p1156_p10)
}
  0x1a   :  { %s1160_s4 = scalar_lea.vmem %s28_s24, 512  ;;  %p1165_p12 = scmp.lt.s32.totalorder %s28_s24, %s28_s24 }
  0x1b   :  { %p1161_p11 = scmp.ne.s32.totalorder %s28_s24, %s1160_s4  ;;  %p1166_p13 = scmp.lt.s32.totalorder %s1160_s4, %s1160_s4 }
  0x1d   :  { %p1167_p0 = por %p1166_p13, %p1165_p12 }
  0x1f   :  { %p1168_p1 = pnand %p1167_p0, %p1161_p11 }
  0x21   :  { %1171 = shalt.err (!%p1168_p1)
}
  0x22   :  { %33 = dma.hbm_to_vmem [thread:$0]  %s1363_s1, 512, %s28_s24, [#allocation8], %s1201_s19, %s1201_s19, %s1202_s20  }
  0x23   :  { %1194 = dma.done.wait [#allocation5], 1024  }
  0x24   :  { %1195 = vsyncadd [#allocation5], 4294966272 }
  0x25   :  { %1196 = dma.done.wait [#allocation8], 512  }
  0x26   :  { %1197 = vsyncadd [#allocation8], 4294966784  ;;  %vm44_vm0 = vcmask 261120   ;;  %v1204_v0 = vmov 0.0|0.0   ;;  %vm1205_vm1 = vmmov 0   ;;  %v1206_v1 = vmov 0.0  }
  0x27   :  { %1021 = vmatprep.subr.bf16.mxu0 %v1204_v0  ;;  %941 = vmatprep.mubr.msk.f32.mxu0 %vm1205_vm1, %v1206_v1  ;;  %45 = vst.msk [vmem:[#allocation2] sm:$0xff] %vm44_vm0, %v1206_v1  ;;  %46 = vst.msk [vmem:[#allocation3] sm:$0xff] %vm44_vm0, %v1206_v1  ;;  %v47_v2 = vld [vmem:[#allocation7] sm:$0xff]  ;;  %v48_v3 = vld [vmem:[#allocation7 + $0x8] sm:$0xff]  ;;  %s1207_s1 = smov 64   ;;  %s1208_s6 = smov 32  }
  0x28   :  { %1027 = vmatprep.subr.bf16.mxu1 %v1204_v0  ;;  %952 = vmatprep.mubr.msk.f32.mxu1 %vm1205_vm1, %v1206_v1  ;;  %v49_v4 = vld [vmem:[#allocation7 + $0x10] sm:$0xff]  ;;  %v1260_v5 = vpack.c.bf16 %v48_v3, %v47_v2  ;;  %v50_v6 = vld [vmem:[#allocation7 + $0x18] sm:$0xff]  ;;  %v53_v9 = vld [vmem:[#allocation4] sm:$0xff]  ;;  %s1209_s7 = smov 96   ;;  %s1210_s8 = smov [#allocation9]  }
  0x29   :  { %v1263_v7 = vpack.c.bf16 %v50_v6, %v49_v4  ;;  %v156_v29 = vld [vmem:[#allocation4 + $0x8] sm:$0xff]  ;;  %v256_v47 = vld [vmem:[#allocation4 + $0x10] sm:$0xff]  ;;  %v356_v3 = vld [vmem:[#allocation4 + $0x18] sm:$0xff]  ;;  %s875_s9 = sshll.u32 %s1210_s8, 4  ;;  %s876_s9 = int_to_ptr.vmem [resolvable:$true] %s875_s9 }
  0x2a   :  { %1023 = vmatpush3.bf16.msra.mxu0 %v1260_v5  ;;  %1029 = vmatpush3.bf16.msra.mxu1 %v1260_v5  ;;  %s1172_s10 = scalar_lea.vmem %s876_s9, 128  ;;  %p1177_p3 = scmp.lt.s32.totalorder %s876_s9, %s876_s9 }
  0x2b   :  { %1024 = vmatprep.subr.bf16.mxu0 %v1204_v0  ;;  %1030 = vmatprep.subr.bf16.mxu1 %v1204_v0  ;;  %p1173_p2 = scmp.ne.s32.totalorder %s876_s9, %s1172_s10  ;;  %p1178_p4 = scmp.lt.s32.totalorder %s1172_s10, %s1172_s10 }
  0x2d   :  { %p1179_p5 = por %p1178_p4, %p1177_p3 }
  0x2e   :  { %1026 = vmatpush3.bf16.msra.mxu0 %v1263_v7  ;;  %v51_v8 = vld [vmem:[#allocation2] sm:$0xff]  ;;  %1032 = vmatpush3.bf16.msra.mxu1 %v1263_v7  ;;  %v52_v14 = vld [vmem:[#allocation3] sm:$0xff] }
  0x2f   :  { %1033 = vmatprep.subr.bf16.mxu0 %v1204_v0  ;;  %1039 = vmatprep.subr.bf16.mxu1 %v1204_v0  ;;  %p1180_p6 = pnand %p1179_p5, %p1173_p2 }
  0x31   :  { %942 = vmatmul.mubr.msk.f32.vlgmr.msra.gmra.mrb[0].mxu0 %vm44_vm0, %v51_v8 }
  0x32   :  { %1035 = vmatpush3.bf16.msra.mxu0 %v1260_v5  ;;  %963 = vmatprep.mubr.msk.f32.mxu0 %vm1205_vm1, %v1206_v1 }
  0x33   :  { %1036 = vmatprep.subr.bf16.mxu0 %v1204_v0 }
  0x36   :  { %1038 = vmatpush3.bf16.msra.mxu0 %v1263_v7 }
  0x37   :  { %1045 = vmatprep.subr.bf16.mxu0 %v1204_v0 }
 0x104   :  { %v124_v10 = vpop.f32.mrb[0].mxu0 }
 0x105   :  { %v128_v11 = vadd.f32 %v124_v10, %v53_v9  ;;  %v943_v12 = vpop.f32.mrb[1].mxu0 }
 0x107   :  { %1080 = vtanh.f32 %v128_v11  ;;  %v129_v15 = vmul.f32 0.5, %v128_v11 }
 0x109   :  { %1082 = vtanh.f32 %v129_v15 }
 0x111   :  { %v1081_v13 = vpop.eup %1080 }
 0x112   :  { %140 = vrot.lane.b32.xlu0 %v1081_v13, %s1207_s1 }
 0x113   :  { %v1083_v16 = vpop.eup %1082 }
 0x114   :  { %v131_v17 = vmul.f32 0.5, %v1083_v16 }
 0x116   :  { %135 = vrot.lane.b32.xlu0 %v52_v14, %s1208_s6  ;;  %v132_v18 = vadd.f32 0.5, %v131_v17 }
 0x184   :  { %v141_v19 = vpop.permute.xlu0 %140 }
 0x185   :  { %v143_v20 = vmul.f32 %v141_v19, %v132_v18 }
 0x187   :  { %145 = vrot.lane.b32.xlu1 %v143_v20, %s1208_s6 }
 0x188   :  { %v136_v21 = vpop.permute.xlu0 %135 }
 0x189   :  { %v138_v22 = vmul.f32 %v136_v21, %v132_v18 }
 0x1f9   :  { %v146_v23 = vpop.permute.xlu1 %145 }
 0x1fa   :  { %v148_v24 = vadd.f32 %v146_v23, %v138_v22  ;;  %v456_v23 = vld [vmem:[#allocation4 + $0x20] sm:$0xff] }
 0x1fc   :  { %1084 = vtanh.f32 %v148_v24 }
 0x206   :  { %v1085_v25 = vpop.eup %1084 }
 0x207   :  { %151 = vrot.lane.b32.xlu1 %v1085_v25, %s1207_s1 }
 0x279   :  { %v152_v26 = vpop.permute.xlu1 %151 }
 0x27a   :  { %v154_v27 = vmul.f32 %v152_v26, %v132_v18 }
 0x27c   :  { %158 = vrot.lane.b32.xlu0 %v154_v27, %s1208_s6 }
 0x2ee   :  { %v159_v28 = vpop.permute.xlu0 %158 }
 0x2ef   :  { %953 = vmatmul.mubr.msk.f32.vlgmr.msra.gmra.mrb[0].mxu1 %vm44_vm0, %v159_v28 }
 0x2f0   :  { %1041 = vmatpush3.bf16.msra.mxu1 %v1260_v5  ;;  %974 = vmatprep.mubr.msk.f32.mxu1 %vm1205_vm1, %v1206_v1 }
 0x2f1   :  { %1042 = vmatprep.subr.bf16.mxu1 %v1204_v0 }
 0x2f4   :  { %1044 = vmatpush3.bf16.msra.mxu1 %v1263_v7 }
 0x2f5   :  { %1051 = vmatprep.subr.bf16.mxu1 %v1204_v0 }
 0x3c2   :  { %v228_v30 = vpop.f32.mrb[0].mxu1 }
 0x3c3   :  { %v232_v31 = vadd.f32 %v228_v30, %v156_v29  ;;  %v954_v32 = vpop.f32.mrb[1].mxu1 }
 0x3c5   :  { %1086 = vtanh.f32 %v232_v31  ;;  %v233_v34 = vmul.f32 0.5, %v232_v31 }
 0x3c7   :  { %1088 = vtanh.f32 %v233_v34 }
 0x3cf   :  { %v1087_v33 = vpop.eup %1086 }
 0x3d0   :  { %240 = vrot.lane.b32.xlu1 %v1087_v33, %s1207_s1 }
 0x3d1   :  { %v1089_v35 = vpop.eup %1088 }
 0x3d2   :  { %v235_v36 = vmul.f32 0.5, %v1089_v35 }
 0x3d4   :  { %v236_v37 = vadd.f32 0.5, %v235_v36 }
 0x3d6   :  { %v238_v40 = vmul.f32 %v236_v37, %v148_v24 }
 0x442   :  { %v241_v38 = vpop.permute.xlu1 %240 }
 0x443   :  { %v243_v39 = vmul.f32 %v241_v38, %v236_v37 }
 0x445   :  { %245 = vrot.lane.b32.xlu0 %v243_v39, %s1208_s6 }
 0x4b7   :  { %v246_v41 = vpop.permute.xlu0 %245 }
 0x4b8   :  { %v248_v42 = vadd.f32 %v246_v41, %v238_v40  ;;  %v556_v41 = vld [vmem:[#allocation4 + $0x28] sm:$0xff] }
 0x4ba   :  { %1090 = vtanh.f32 %v248_v42 }
 0x4c4   :  { %v1091_v43 = vpop.eup %1090 }
 0x4c5   :  { %251 = vrot.lane.b32.xlu1 %v1091_v43, %s1207_s1 }
 0x537   :  { %v252_v44 = vpop.permute.xlu1 %251 }
 0x538   :  { %v254_v45 = vmul.f32 %v252_v44, %v236_v37 }
 0x53a   :  { %258 = vrot.lane.b32.xlu0 %v254_v45, %s1208_s6 }
 0x5ac   :  { %v259_v46 = vpop.permute.xlu0 %258 }
 0x5ad   :  { %964 = vmatmul.mubr.msk.f32.vlgmr.msra.gmra.mrb[2].mxu0 %vm44_vm0, %v259_v46 }
 0x5ae   :  { %1047 = vmatpush3.bf16.msra.mxu0 %v1260_v5  ;;  %985 = vmatprep.mubr.msk.f32.mxu0 %vm1205_vm1, %v1206_v1 }
 0x5af   :  { %1048 = vmatprep.subr.bf16.mxu0 %v1204_v0 }
 0x5b2   :  { %1050 = vmatpush3.bf16.msra.mxu0 %v1263_v7 }
 0x5b3   :  { %1057 = vmatprep.subr.bf16.mxu0 %v1204_v0 }
 0x680   :  { %v328_v48 = vpop.f32.mrb[2].mxu0 }
 0x681   :  { %v332_v49 = vadd.f32 %v328_v48, %v256_v47  ;;  %v965_v50 = vpop.f32.mrb[3].mxu0 }
 0x683   :  { %1092 = vtanh.f32 %v332_v49  ;;  %v333_v52 = vmul.f32 0.5, %v332_v49 }
 0x685   :  { %1094 = vtanh.f32 %v333_v52 }
 0x68d   :  { %v1093_v51 = vpop.eup %1092 }
 0x68e   :  { %340 = vrot.lane.b32.xlu1 %v1093_v51, %s1207_s1 }
 0x68f   :  { %v1095_v53 = vpop.eup %1094 }
 0x690   :  { %v335_v54 = vmul.f32 0.5, %v1095_v53 }
 0x692   :  { %v336_v55 = vadd.f32 0.5, %v335_v54 }
 0x694   :  { %v338_v58 = vmul.f32 %v336_v55, %v248_v42 }
 0x700   :  { %v341_v56 = vpop.permute.xlu1 %340 }
 0x701   :  { %v343_v57 = vmul.f32 %v341_v56, %v336_v55 }
 0x703   :  { %345 = vrot.lane.b32.xlu0 %v343_v57, %s1208_s6 }
 0x775   :  { %v346_v59 = vpop.permute.xlu0 %345 }
 0x776   :  { %v348_v60 = vadd.f32 %v346_v59, %v338_v58 }
 0x778   :  { %1096 = vtanh.f32 %v348_v60 }
 0x782   :  { %v1097_v61 = vpop.eup %1096 }
 0x783   :  { %351 = vrot.lane.b32.xlu1 %v1097_v61, %s1207_s1 }
 0x7f5   :  { %v352_v62 = vpop.permute.xlu1 %351 }
 0x7f6   :  { %v354_v63 = vmul.f32 %v352_v62, %v336_v55  ;;  %v656_v55 = vld [vmem:[#allocation4 + $0x30] sm:$0xff] }
 0x7f8   :  { %358 = vrot.lane.b32.xlu0 %v354_v63, %s1208_s6 }
 0x86a   :  { %v359_v2 = vpop.permute.xlu0 %358 }
 0x86b   :  { %975 = vmatmul.mubr.msk.f32.vlgmr.msra.gmra.mrb[2].mxu1 %vm44_vm0, %v359_v2 }
 0x86c   :  { %1053 = vmatpush3.bf16.msra.mxu1 %v1260_v5  ;;  %996 = vmatprep.mubr.msk.f32.mxu1 %vm1205_vm1, %v1206_v1 }
 0x86d   :  { %1054 = vmatprep.subr.bf16.mxu1 %v1204_v0 }
 0x870   :  { %1056 = vmatpush3.bf16.msra.mxu1 %v1263_v7 }
 0x871   :  { %1063 = vmatprep.subr.bf16.mxu1 %v1204_v0 }
 0x93e   :  { %v428_v4 = vpop.f32.mrb[2].mxu1 }
 0x93f   :  { %v432_v6 = vadd.f32 %v428_v4, %v356_v3  ;;  %v976_v8 = vpop.f32.mrb[3].mxu1 }
 0x941   :  { %1098 = vtanh.f32 %v432_v6  ;;  %v433_v10 = vmul.f32 0.5, %v432_v6 }
 0x943   :  { %1100 = vtanh.f32 %v433_v10 }
 0x94b   :  { %v1099_v9 = vpop.eup %1098 }
 0x94c   :  { %440 = vrot.lane.b32.xlu1 %v1099_v9, %s1207_s1 }
 0x94d   :  { %v1101_v11 = vpop.eup %1100 }
 0x94e   :  { %v435_v12 = vmul.f32 0.5, %v1101_v11 }
 0x950   :  { %v436_v13 = vadd.f32 0.5, %v435_v12 }
 0x952   :  { %v438_v16 = vmul.f32 %v436_v13, %v348_v60 }
 0x9be   :  { %v441_v14 = vpop.permute.xlu1 %440 }
 0x9bf   :  { %v443_v15 = vmul.f32 %v441_v14, %v436_v13 }
 0x9c1   :  { %445 = vrot.lane.b32.xlu0 %v443_v15, %s1208_s6 }
 0xa33   :  { %v446_v17 = vpop.permute.xlu0 %445 }
 0xa34   :  { %v448_v18 = vadd.f32 %v446_v17, %v438_v16 }
 0xa36   :  { %1102 = vtanh.f32 %v448_v18 }
 0xa40   :  { %v1103_v19 = vpop.eup %1102 }
 0xa41   :  { %451 = vrot.lane.b32.xlu1 %v1103_v19, %s1207_s1 }
 0xab3   :  { %v452_v20 = vpop.permute.xlu1 %451 }
 0xab4   :  { %v454_v21 = vmul.f32 %v452_v20, %v436_v13  ;;  %v756_v13 = vld [vmem:[#allocation4 + $0x38] sm:$0xff] }
 0xab6   :  { %458 = vrot.lane.b32.xlu0 %v454_v21, %s1208_s6 }
 0xb28   :  { %v459_v22 = vpop.permute.xlu0 %458 }
 0xb29   :  { %986 = vmatmul.mubr.msk.f32.vlgmr.msra.gmra.mrb[4].mxu0 %vm44_vm0, %v459_v22 }
 0xb2a   :  { %1059 = vmatpush3.bf16.msra.mxu0 %v1260_v5  ;;  %1007 = vmatprep.mubr.msk.f32.mxu0 %vm1205_vm1, %v1206_v1 }
 0xb2b   :  { %1060 = vmatprep.subr.bf16.mxu0 %v1204_v0 }
 0xb2e   :  { %1062 = vmatpush3.bf16.msra.mxu0 %v1263_v7 }
 0xbfc   :  { %v528_v24 = vpop.f32.mrb[4].mxu0 }
 0xbfd   :  { %v532_v25 = vadd.f32 %v528_v24, %v456_v23  ;;  %v987_v26 = vpop.f32.mrb[5].mxu0 }
 0xbff   :  { %1104 = vtanh.f32 %v532_v25  ;;  %v533_v28 = vmul.f32 0.5, %v532_v25 }
 0xc01   :  { %1106 = vtanh.f32 %v533_v28 }
 0xc09   :  { %v1105_v27 = vpop.eup %1104 }
 0xc0a   :  { %540 = vrot.lane.b32.xlu1 %v1105_v27, %s1207_s1 }
 0xc0b   :  { %v1107_v29 = vpop.eup %1106 }
 0xc0c   :  { %v535_v30 = vmul.f32 0.5, %v1107_v29 }
 0xc0e   :  { %v536_v31 = vadd.f32 0.5, %v535_v30 }
 0xc10   :  { %v538_v34 = vmul.f32 %v536_v31, %v448_v18 }
 0xc7c   :  { %v541_v32 = vpop.permute.xlu1 %540 }
 0xc7d   :  { %v543_v33 = vmul.f32 %v541_v32, %v536_v31 }
 0xc7f   :  { %545 = vrot.lane.b32.xlu0 %v543_v33, %s1208_s6 }
 0xcf1   :  { %v546_v35 = vpop.permute.xlu0 %545 }
 0xcf2   :  { %v548_v36 = vadd.f32 %v546_v35, %v538_v34 }
 0xcf4   :  { %1108 = vtanh.f32 %v548_v36 }
 0xcfe   :  { %v1109_v37 = vpop.eup %1108 }
 0xcff   :  { %551 = vrot.lane.b32.xlu1 %v1109_v37, %s1207_s1 }
 0xd71   :  { %v552_v38 = vpop.permute.xlu1 %551 }
 0xd72   :  { %v554_v39 = vmul.f32 %v552_v38, %v536_v31 }
 0xd74   :  { %558 = vrot.lane.b32.xlu0 %v554_v39, %s1208_s6 }
 0xde6   :  { %v559_v40 = vpop.permute.xlu0 %558 }
 0xde7   :  { %997 = vmatmul.mubr.msk.f32.vlgmr.msra.gmra.mrb[4].mxu1 %vm44_vm0, %v559_v40 }
 0xde8   :  { %1065 = vmatpush3.bf16.msra.mxu1 %v1260_v5  ;;  %1018 = vmatprep.mubr.msk.f32.mxu1 %vm1205_vm1, %v1206_v1 }
 0xde9   :  { %1066 = vmatprep.subr.bf16.mxu1 %v1204_v0 }
 0xdec   :  { %1068 = vmatpush3.bf16.msra.mxu1 %v1263_v7 }
 0xeba   :  { %v628_v42 = vpop.f32.mrb[4].mxu1 }
 0xebb   :  { %v632_v43 = vadd.f32 %v628_v42, %v556_v41  ;;  %v998_v44 = vpop.f32.mrb[5].mxu1 }
 0xebd   :  { %1110 = vtanh.f32 %v632_v43  ;;  %v633_v46 = vmul.f32 0.5, %v632_v43 }
 0xebf   :  { %1112 = vtanh.f32 %v633_v46 }
 0xec7   :  { %v1111_v45 = vpop.eup %1110 }
 0xec8   :  { %640 = vrot.lane.b32.xlu1 %v1111_v45, %s1207_s1 }
 0xec9   :  { %v1113_v47 = vpop.eup %1112 }
 0xeca   :  { %v635_v48 = vmul.f32 0.5, %v1113_v47 }
 0xecc   :  { %v636_v5 = vadd.f32 0.5, %v635_v48 }
 0xece   :  { %v638_v0 = vmul.f32 %v636_v5, %v548_v36 }
 0xf3a   :  { %v641_v49 = vpop.permute.xlu1 %640 }
 0xf3b   :  { %v643_v50 = vmul.f32 %v641_v49, %v636_v5 }
 0xf3d   :  { %645 = vrot.lane.b32.xlu0 %v643_v50, %s1208_s6 }
 0xfaf   :  { %v646_v1 = vpop.permute.xlu0 %645 }
 0xfb0   :  { %v648_v7 = vadd.f32 %v646_v1, %v638_v0 }
 0xfb2   :  { %1114 = vtanh.f32 %v648_v7 }
 0xfbc   :  { %v1115_v51 = vpop.eup %1114 }
 0xfbd   :  { %651 = vrot.lane.b32.xlu1 %v1115_v51, %s1207_s1 }
0x102f   :  { %v652_v52 = vpop.permute.xlu1 %651 }
0x1030   :  { %v654_v53 = vmul.f32 %v652_v52, %v636_v5 }
0x1032   :  { %658 = vrot.lane.b32.xlu0 %v654_v53, %s1208_s6 }
0x10a4   :  { %v659_v54 = vpop.permute.xlu0 %658 }
0x10a5   :  { %1008 = vmatmul.mubr.msk.f32.vlgmr.msra.gmra.mrb[6].mxu0 %vm44_vm0, %v659_v54 }
0x1178   :  { %v728_v56 = vpop.f32.mrb[6].mxu0 }
0x1179   :  { %v732_v57 = vadd.f32 %v728_v56, %v656_v55  ;;  %v1009_v58 = vpop.f32.mrb[7].mxu0 }
0x117b   :  { %1116 = vtanh.f32 %v732_v57  ;;  %v733_v60 = vmul.f32 0.5, %v732_v57 }
0x117d   :  { %1118 = vtanh.f32 %v733_v60 }
0x1185   :  { %v1117_v59 = vpop.eup %1116 }
0x1186   :  { %740 = vrot.lane.b32.xlu1 %v1117_v59, %s1207_s1 }
0x1187   :  { %v1119_v61 = vpop.eup %1118 }
0x1188   :  { %v735_v62 = vmul.f32 0.5, %v1119_v61 }
0x118a   :  { %v736_v63 = vadd.f32 0.5, %v735_v62 }
0x118c   :  { %v738_v4 = vmul.f32 %v736_v63, %v648_v7 }
0x11f8   :  { %v741_v2 = vpop.permute.xlu1 %740 }
0x11f9   :  { %v743_v3 = vmul.f32 %v741_v2, %v736_v63 }
0x11fb   :  { %745 = vrot.lane.b32.xlu0 %v743_v3, %s1208_s6 }
0x126d   :  { %v746_v6 = vpop.permute.xlu0 %745 }
0x126e   :  { %v748_v8 = vadd.f32 %v746_v6, %v738_v4 }
0x1270   :  { %1120 = vtanh.f32 %v748_v8 }
0x127a   :  { %v1121_v9 = vpop.eup %1120 }
0x127b   :  { %751 = vrot.lane.b32.xlu1 %v1121_v9, %s1207_s1 }
0x12ed   :  { %v752_v10 = vpop.permute.xlu1 %751 }
0x12ee   :  { %v754_v11 = vmul.f32 %v752_v10, %v736_v63 }
0x12f0   :  { %758 = vrot.lane.b32.xlu0 %v754_v11, %s1208_s6 }
0x1362   :  { %v759_v12 = vpop.permute.xlu0 %758 }
0x1363   :  { %1019 = vmatmul.mubr.msk.f32.vlgmr.msra.gmra.mrb[6].mxu1 %vm44_vm0, %v759_v12 }
0x1436   :  { %v828_v14 = vpop.f32.mrb[6].mxu1 }
0x1437   :  { %v832_v15 = vadd.f32 %v828_v14, %v756_v13  ;;  %v1020_v16 = vpop.f32.mrb[7].mxu1 }
0x1439   :  { %1122 = vtanh.f32 %v832_v15  ;;  %v833_v18 = vmul.f32 0.5, %v832_v15 }
0x143b   :  { %1124 = vtanh.f32 %v833_v18 }
0x1443   :  { %v1123_v17 = vpop.eup %1122 }
0x1444   :  { %840 = vrot.lane.b32.xlu1 %v1123_v17, %s1207_s1 }
0x1445   :  { %v1125_v19 = vpop.eup %1124 }
0x1446   :  { %v835_v20 = vmul.f32 0.5, %v1125_v19 }
0x1448   :  { %v836_v21 = vadd.f32 0.5, %v835_v20 }
0x144a   :  { %v838_v24 = vmul.f32 %v836_v21, %v748_v8 }
0x14b6   :  { %v841_v22 = vpop.permute.xlu1 %840 }
0x14b7   :  { %v843_v23 = vmul.f32 %v841_v22, %v836_v21 }
0x14b9   :  { %845 = vrot.lane.b32.xlu0 %v843_v23, %s1208_s6 }
0x152b   :  { %v846_v25 = vpop.permute.xlu0 %845 }
0x152c   :  { %v848_v26 = vadd.f32 %v846_v25, %v838_v24 }
0x152e   :  { %1126 = vtanh.f32 %v848_v26 }
0x1538   :  { %v1127_v27 = vpop.eup %1126 }
0x1539   :  { %851 = vrot.lane.b32.xlu1 %v1127_v27, %s1207_s1 }
0x153d   :  { %861 = vrot.lane.b32.xlu1 %v848_v26, %s1209_s7 }
0x15ab   :  { %v852_v28 = vpop.permute.xlu1 %851 }
0x15ac   :  { %v854_v29 = vmul.f32 %v852_v28, %v836_v21 }
0x15ae   :  { %856 = vrot.lane.b32.xlu0 %v854_v29, %s1208_s6 }
0x15af   :  { %v862_v30 = vpop.permute.xlu1 %861 }
0x15b0   :  { %864 = vst.msk [vmem:[#allocation3] sm:$0xff] %vm44_vm0, %v862_v30 }
0x1620   :  { %v857_v31 = vpop.permute.xlu0 %856 }
0x1621   :  { %859 = vst.msk [vmem:[#allocation2] sm:$0xff] %vm44_vm0, %v857_v31  ;;  %868 = vst.msk [vmem:[#allocation9] sm:$0xff] %vm44_vm0, %v857_v31 }
0x1622   :  { %1183 = shalt.err (!%p1180_p6)
}
0x1623   :  { %s1184_s13 = scalar_lea.hbm %s1364_s2, 128 }
0x1624   :  { %p1185_p7 = scmp.ne.s32.totalorder %s1364_s2, %s1184_s13  ;;  %p1188_p8 = scmp.lt.u32.totalorder %s1184_s13, %s1364_s2 }
0x1626   :  { %p1190_p9 = pnand %p1188_p8, %p1185_p7 }
0x1628   :  { %1193 = shalt.err (!%p1190_p9)
}
0x1629   :  { %878 = dma.vmem_to_hbm [thread:$0]  %s876_s9, 128, %s1364_s2, [#allocation6]  }
0x162a   :  { %1198 = dma.done.wait [#allocation6], 128  }
0x162b   :  { %1199 = vsyncadd [#allocation6], 4294967168 }
0x162c   :  { %882 = vsyncpa [#allocation5], 1 }
0x162d   :  { %883 = vsyncpa [#allocation8], 1 }
0x162e   :  { %884 = vsyncpa [#allocation6], 1 }

</bundles_post_ra>
